<compile_context>
chip_gen: v6e
topology: v6e:2x2x1
jax: 0.10.0
libtpu: 0.0.40
codegen_flags: <defaults>
</compile_context>

<pallas_src>
import jax
import jax.numpy as jnp
from jax.experimental import pallas as pl
from jax.experimental.pallas import tpu as pltpu


def _round_up(x, m):
    return -(-x // m) * m


def _mlp_kernel(x_ref, w1_ref, b1_ref, w2_ref, b2_ref, o_ref):
    # First linear + ReLU (MXU + VPU), f32 accumulation.
    h = jnp.dot(x_ref[...], w1_ref[...], preferred_element_type=jnp.float32)
    h = jnp.maximum(h + b1_ref[...], 0.0)          # b1 is (1, H) -> broadcasts
    # Second linear; cast h to the weight dtype (no-op in f32, bf16 if enabled).
    y = jnp.dot(h.astype(w2_ref.dtype), w2_ref[...],
                preferred_element_type=jnp.float32)
    o_ref[...] = (y + b2_ref[...]).astype(o_ref.dtype)


def job_recommender_mlp(x, w1, b1, w2, b2, *, block_b=2048, compute_dtype=None):
    """Fused MLP forward: relu(x @ w1 + b1) @ w2 + b2.

    x:  [B, D_in]   float32
    w1: [D_in, H]   float32   (transposed PyTorch layout)
    b1: [1, H]      float32
    w2: [H, D_out]  float32
    b2: [1, D_out]  float32
    compute_dtype: optional (e.g. jnp.bfloat16) — dtype for the matmul inputs;
                   accumulation stays f32. None keeps exact f32 math.
    returns [B, D_out] float32
    """
    B, D_in = x.shape
    H = w1.shape[1]
    D_out = w2.shape[1]

    if compute_dtype is not None:
        x = x.astype(compute_dtype)
        w1 = w1.astype(compute_dtype)
        w2 = w2.astype(compute_dtype)
    # Biases stay f32 and are added in f32 inside the kernel.

    # Batch tile: as large as possible to amortize the ~0.35 us/step pipeline
    # overhead, multiple of 8 (sublane), but no larger than ceil(B/2) rounded up
    # so the grid has >= 2 steps when B allows it (v7x megacore).
    tb = max(8, min(block_b, _round_up(pl.cdiv(B, 2), 8)))
    grid = (pl.cdiv(B, tb),)  # ragged last block handled by Pallas (no x pad copy)

    out = pl.pallas_call(
        _mlp_kernel,
        out_shape=jax.ShapeDtypeStruct((B, D_out), jnp.float32),
        grid_spec=pltpu.PrefetchScalarGridSpec(
            num_scalar_prefetch=0,
            grid=grid,
            in_specs=[
                pl.BlockSpec((tb, D_in), lambda i: (i, 0)),    # x tile (per step)
                pl.BlockSpec((D_in, H), lambda i: (0, 0)),     # W1 resident
                pl.BlockSpec((1, H), lambda i: (0, 0)),        # b1 resident
                pl.BlockSpec((H, D_out), lambda i: (0, 0)),    # W2 resident
                pl.BlockSpec((1, D_out), lambda i: (0, 0)),    # b2 resident
            ],
            # Native-width output block (last dim == full array dim): no 4x
            # write amplification, no post-call slice.
            out_specs=pl.BlockSpec((tb, D_out), lambda i: (i, 0)),
        ),
        compiler_params=pltpu.CompilerParams(
            dimension_semantics=("parallel",),   # shard batch axis across TCs (v7x)
        ),
    )(x, w1, b1, w2, b2)

    return out


def _init_params(key, input_dim, hidden_dim, output_dim):
    """Deterministic init mimicking nn.Linear's uniform(-1/sqrt(fan_in), ...)."""
    k1, k2, k3, k4 = jax.random.split(key, 4)
    bound1 = 1.0 / jnp.sqrt(input_dim)
    bound2 = 1.0 / jnp.sqrt(hidden_dim)
    w1 = jax.random.uniform(k1, (input_dim, hidden_dim), jnp.float32, -bound1, bound1)
    b1 = jax.random.uniform(k2, (1, hidden_dim), jnp.float32, -bound1, bound1)
    w2 = jax.random.uniform(k3, (hidden_dim, output_dim), jnp.float32, -bound2, bound2)
    b2 = jax.random.uniform(k4, (1, output_dim), jnp.float32, -bound2, bound2)
    return w1, b1, w2, b2


if __name__ == "__main__":
    # Small shapes consistent with the module:
    #   input_dim  = X_aug.shape[1]  -> 16 (augmented Big-Five features)
    #   hidden_dim = 128             (as in the script)
    #   output_dim = len(job_names)  -> 32 jobs
    batch, input_dim, hidden_dim, output_dim = 8, 16, 128, 32

    key = jax.random.PRNGKey(0)
    kx, kp = jax.random.split(key)
    x = jax.random.normal(kx, (batch, input_dim), jnp.float32)
    w1, b1, w2, b2 = _init_params(kp, input_dim, hidden_dim, output_dim)

    # Exact f32 path vs pure-JAX reference.
    out = job_recommender_mlp(x, w1, b1, w2, b2)
    jax.block_until_ready(out)
    ref = jnp.maximum(x @ w1 + b1, 0.0) @ w2 + b2
    assert out.shape == (batch, output_dim)
    assert jnp.allclose(out, ref, atol=1e-5, rtol=1e-5)

    # Batch that is not a tile multiple and spans >1 grid step (ragged edge).
    xb = jax.random.normal(kx, (300, input_dim), jnp.float32)
    outb = job_recommender_mlp(xb, w1, b1, w2, b2)
    jax.block_until_ready(outb)
    refb = jnp.maximum(xb @ w1 + b1, 0.0) @ w2 + b2
    assert outb.shape == (300, output_dim)
    assert jnp.allclose(outb, refb, atol=1e-5, rtol=1e-5)

    # Optional bf16-input path (f32 accumulation) — looser tolerance vs f32 ref.
    outb16 = job_recommender_mlp(xb, w1, b1, w2, b2, compute_dtype=jnp.bfloat16)
    jax.block_until_ready(outb16)
    assert outb16.shape == (300, output_dim)
    assert jnp.allclose(outb16, refb, atol=1e-1, rtol=1e-1)

    print("KERNEL_OK")
</pallas_src>

<mosaic_0001>
module attributes {stable_mosaic.version = 11 : i64} {
  func.func @_mlp_kernel(%arg0: i32, %arg1: memref<8x16xf32, #tpu.memory_space<vmem>>, %arg2: memref<16x128xf32, #tpu.memory_space<vmem>>, %arg3: memref<1x128xf32, #tpu.memory_space<vmem>>, %arg4: memref<128x32xf32, #tpu.memory_space<vmem>>, %arg5: memref<1x32xf32, #tpu.memory_space<vmem>>, %arg6: memref<8x32xf32, #tpu.memory_space<vmem>>) attributes {dimension_semantics = [#tpu.dimension_semantics<parallel>], iteration_bounds = array<i64: 1>, scalar_prefetch = 0 : i64, scratch_operands = 0 : i64, tpu.core_type = #tpu.core_type<tc>, window_params = [{transform_indices = @transform_0, window_bounds = array<i64: 8, 16>}, {pipeline_mode = #tpu.pipeline_mode<synchronous>, transform_indices = @transform_1, window_bounds = array<i64: 16, 128>}, {pipeline_mode = #tpu.pipeline_mode<synchronous>, transform_indices = @transform_2, window_bounds = array<i64: 1, 128>}, {pipeline_mode = #tpu.pipeline_mode<synchronous>, transform_indices = @transform_3, window_bounds = array<i64: 128, 32>}, {pipeline_mode = #tpu.pipeline_mode<synchronous>, transform_indices = @transform_4, window_bounds = array<i64: 1, 32>}, {transform_indices = @transform_5, window_bounds = array<i64: 8, 32>}]} {
    %c0 = arith.constant 0 : index
    %c0_0 = arith.constant 0 : index
    %0 = vector.load %arg1[%c0, %c0_0] : memref<8x16xf32, #tpu.memory_space<vmem>>, vector<8x16xf32>
    %c0_1 = arith.constant 0 : index
    %c0_2 = arith.constant 0 : index
    %1 = vector.load %arg2[%c0_1, %c0_2] : memref<16x128xf32, #tpu.memory_space<vmem>>, vector<16x128xf32>
    %cst = arith.constant dense<0.000000e+00> : vector<8x128xf32>
    %2 = tpu.matmul %0, %1, %cst {dimension_numbers = #tpu.dot_dimension_numbers<[1], [0], [0], [1], [0, 0, 1, 1], [], []>} : vector<8x16xf32>, vector<16x128xf32>, vector<8x128xf32> -> vector<8x128xf32>
    %c0_3 = arith.constant 0 : index
    %c0_4 = arith.constant 0 : index
    %3 = vector.load %arg3[%c0_3, %c0_4] : memref<1x128xf32, #tpu.memory_space<vmem>>, vector<1x128xf32>
    %4 = vector.broadcast %3 : vector<1x128xf32> to vector<8x128xf32>
    %5 = arith.addf %2, %4 : vector<8x128xf32>
    %cst_5 = arith.constant 0.000000e+00 : f32
    %6 = vector.broadcast %cst_5 : f32 to vector<8x128xf32>
    %7 = arith.maximumf %5, %6 : vector<8x128xf32>
    %c0_6 = arith.constant 0 : index
    %c0_7 = arith.constant 0 : index
    %8 = vector.load %arg4[%c0_6, %c0_7] : memref<128x32xf32, #tpu.memory_space<vmem>>, vector<128x32xf32>
    %cst_8 = arith.constant dense<0.000000e+00> : vector<8x32xf32>
    %9 = tpu.matmul %7, %8, %cst_8 {dimension_numbers = #tpu.dot_dimension_numbers<[1], [0], [0], [1], [0, 0, 1, 1], [], []>} : vector<8x128xf32>, vector<128x32xf32>, vector<8x32xf32> -> vector<8x32xf32>
    %c0_9 = arith.constant 0 : index
    %c0_10 = arith.constant 0 : index
    %10 = vector.load %arg5[%c0_9, %c0_10] : memref<1x32xf32, #tpu.memory_space<vmem>>, vector<1x32xf32>
    %11 = vector.broadcast %10 : vector<1x32xf32> to vector<8x32xf32>
    %12 = arith.addf %9, %11 : vector<8x32xf32>
    %c0_11 = arith.constant 0 : index
    %c0_12 = arith.constant 0 : index
    %13 = vector.load %arg6[%c0_11, %c0_12] : memref<8x32xf32, #tpu.memory_space<vmem>>, vector<8x32xf32>
    tpu.vector_store %arg6[%c0_11, %c0_12], %12 {strides = array<i32>} : memref<8x32xf32, #tpu.memory_space<vmem>>, vector<8x32xf32>,
    return
  }
  func.func @transform_0(%arg0: i32) -> (i32, i32) {
    %c0_i32 = arith.constant 0 : i32
    %c0_i32_0 = arith.constant 0 : i32
    return %arg0, %c0_i32 : i32, i32
  }
  func.func @transform_1(%arg0: i32) -> (i32, i32) {
    %c0_i32 = arith.constant 0 : i32
    %c0_i32_0 = arith.constant 0 : i32
    %c0_i32_1 = arith.constant 0 : i32
    return %c0_i32, %c0_i32_0 : i32, i32
  }
  func.func @transform_2(%arg0: i32) -> (i32, i32) {
    %c0_i32 = arith.constant 0 : i32
    %c0_i32_0 = arith.constant 0 : i32
    %c0_i32_1 = arith.constant 0 : i32
    return %c0_i32, %c0_i32_0 : i32, i32
  }
  func.func @transform_3(%arg0: i32) -> (i32, i32) {
    %c0_i32 = arith.constant 0 : i32
    %c0_i32_0 = arith.constant 0 : i32
    %c0_i32_1 = arith.constant 0 : i32
    return %c0_i32, %c0_i32_0 : i32, i32
  }
  func.func @transform_4(%arg0: i32) -> (i32, i32) {
    %c0_i32 = arith.constant 0 : i32
    %c0_i32_0 = arith.constant 0 : i32
    %c0_i32_1 = arith.constant 0 : i32
    return %c0_i32, %c0_i32_0 : i32, i32
  }
  func.func @transform_5(%arg0: i32) -> (i32, i32) {
    %c0_i32 = arith.constant 0 : i32
    %c0_i32_0 = arith.constant 0 : i32
    return %arg0, %c0_i32 : i32, i32
  }
}

</mosaic_0001>

<bundles_post_ra>
// kernel: tpu_custom_call.1
= control target key start
LH: loop header
LB: loop body
LE: loop exit
PB: predicated region body
PF: predicated region fallthrough
CT: control target
= control target key end

     0   :  { %v305_v1 = vmov 0.0   ;;  %vm306_vm0 = vmmov 0   ;;  %vm31_vm1 = vcmask 130048   ;;  %s406_s0 = inlined_call_operand.vmem [shape: f32[8,16], index: 0, kind: input, shape index: {}]   ;;  %s407_s1 = inlined_call_operand.vmem [shape: f32[16,128], index: 1, kind: input, shape index: {}]   ;;  %s408_s2 = inlined_call_operand.vmem [shape: f32[1,128], index: 2, kind: input, shape index: {}]   ;;  %s409_s3 = inlined_call_operand.vmem [shape: f32[128,32], index: 3, kind: input, shape index: {}]   ;;  %s410_s4 = inlined_call_operand.vmem [shape: f32[1,32], index: 4, kind: input, shape index: {}]   ;;  %s411_s5 = inlined_call_operand.hbm [shape: f32[8,32], index: 5, kind: output, shape index: {}]  }
   0x1   :  { %v23_v0 = vld [vmem:[%s407_s1 + $0x8] sm:$0xff]  ;;  %238 = vmatprep.subr.mxu0 %v305_v1  ;;  %v22_v2 = vld [vmem:[%s407_s1] sm:$0xff]  ;;  %242 = vmatprep.mubr.msk.f32.mxu0 %vm306_vm0, %v305_v1  ;;  %v121_v3 = vld [vmem:[%s409_s3 + $0x78] sm:$0xff] }
   0x2   :  { %239 = vmatpush3.msra.mxu0 %v23_v0  ;;  %v21_v4 = vld [vmem:[%s406_s0] sm:$0xff]  ;;  %245 = vmatprep.subr.mxu1 %v305_v1  ;;  %v120_v5 = vld [vmem:[%s409_s3 + $0x70] sm:$0xff]  ;;  %v119_v6 = vld [vmem:[%s409_s3 + $0x68] sm:$0xff] }
   0x3   :  { %240 = vmatprep.subr.mxu0 %v305_v1  ;;  %246 = vmatpush3.msra.mxu1 %v121_v3 }
   0x4   :  { %241 = vmatpush3.msra.mxu0 %v22_v2  ;;  %247 = vmatprep.subr.mxu1 %v305_v1 }
   0x5   :  { %243 = vmatmul.mubr.msk.f32.vlgmr.msra.gmra.mxu0 %vm31_vm1, %v21_v4  ;;  %248 = vmatpush3.msra.mxu1 %v120_v5 }
   0x6   :  { %10 = vsyncpa [#allocation3], 0  ;;  %249 = vmatprep.subr.mxu1 %v305_v1  ;;  %v118_v7 = vld [vmem:[%s409_s3 + $0x60] sm:$0xff]  ;;  %277 = vmatprep.mubr.msk.f32.mxu1 %vm306_vm0, %v305_v1  ;;  %v117_v8 = vld [vmem:[%s409_s3 + $0x58] sm:$0xff]  ;;  %s307_s6 = smov [#allocation2]   ;;  %vm199_vm2 = vcmask 261120  }
   0x7   :  { %250 = vmatpush3.msra.mxu1 %v119_v6  ;;  %v116_v9 = vld [vmem:[%s409_s3 + $0x50] sm:$0xff]  ;;  %v115_v10 = vld [vmem:[%s409_s3 + $0x48] sm:$0xff]  ;;  %v114_v11 = vld [vmem:[%s409_s3 + $0x40] sm:$0xff]  ;;  %s207_s7 = sshll.u32 %s307_s6, 4  ;;  %s208_s7 = int_to_ptr.vmem [resolvable:$true] %s207_s7 }
   0x8   :  { %251 = vmatprep.subr.mxu1 %v305_v1  ;;  %v113_v12 = vld [vmem:[%s409_s3 + $0x38] sm:$0xff]  ;;  %v112_v13 = vld [vmem:[%s409_s3 + $0x30] sm:$0xff]  ;;  %v111_v14 = vld [vmem:[%s409_s3 + $0x28] sm:$0xff]  ;;  %p288_p1 = scmp.lt.s32.totalorder %s208_s7, %s208_s7 }
   0x9   :  { %252 = vmatpush3.msra.mxu1 %v118_v7  ;;  %v110_v15 = vld [vmem:[%s409_s3 + $0x20] sm:$0xff]  ;;  %v109_v16 = vld [vmem:[%s409_s3 + $0x18] sm:$0xff]  ;;  %v108_v17 = vld [vmem:[%s409_s3 + $0x10] sm:$0xff] }
   0xa   :  { %253 = vmatprep.subr.mxu1 %v305_v1  ;;  %v107_v18 = vld [vmem:[%s409_s3 + $0x8] sm:$0xff]  ;;  %v106_v19 = vld [vmem:[%s409_s3] sm:$0xff]  ;;  %s283_s3 = scalar_lea.vmem %s208_s7, 128 }
   0xb   :  { %254 = vmatpush3.msra.mxu1 %v117_v8  ;;  %v215_v20 = vld [vmem:[%s408_s2] ss:$0 sm:$0xff]  ;;  %p284_p0 = scmp.ne.s32.totalorder %s208_s7, %s283_s3  ;;  %p289_p2 = scmp.lt.s32.totalorder %s283_s3, %s283_s3 }
   0xc   :  { %255 = vmatprep.subr.mxu1 %v305_v1  ;;  %v217_v25 = vld [vmem:[%s410_s4] ss:$0 sm:$0xff] }
   0xd   :  { %256 = vmatpush3.msra.mxu1 %v116_v9  ;;  %p290_p3 = por %p289_p2, %p288_p1 }
   0xe   :  { %257 = vmatprep.subr.mxu1 %v305_v1 }
   0xf   :  { %258 = vmatpush3.msra.mxu1 %v115_v10  ;;  %p291_p4 = pnand %p290_p3, %p284_p0 }
  0x10   :  { %259 = vmatprep.subr.mxu1 %v305_v1 }
  0x11   :  { %260 = vmatpush3.msra.mxu1 %v114_v11 }
  0x12   :  { %261 = vmatprep.subr.mxu1 %v305_v1 }
  0x13   :  { %262 = vmatpush3.msra.mxu1 %v113_v12 }
  0x14   :  { %263 = vmatprep.subr.mxu1 %v305_v1 }
  0x15   :  { %264 = vmatpush3.msra.mxu1 %v112_v13 }
  0x16   :  { %265 = vmatprep.subr.mxu1 %v305_v1 }
  0x17   :  { %266 = vmatpush3.msra.mxu1 %v111_v14 }
  0x18   :  { %267 = vmatprep.subr.mxu1 %v305_v1 }
  0x19   :  { %268 = vmatpush3.msra.mxu1 %v110_v15 }
  0x1a   :  { %269 = vmatprep.subr.mxu1 %v305_v1 }
  0x1b   :  { %270 = vmatpush3.msra.mxu1 %v109_v16 }
  0x1c   :  { %271 = vmatprep.subr.mxu1 %v305_v1 }
  0x1d   :  { %272 = vmatpush3.msra.mxu1 %v108_v17 }
  0x1e   :  { %273 = vmatprep.subr.mxu1 %v305_v1 }
  0x1f   :  { %274 = vmatpush3.msra.mxu1 %v107_v18 }
  0x20   :  { %275 = vmatprep.subr.mxu1 %v305_v1 }
  0x21   :  { %276 = vmatpush3.msra.mxu1 %v106_v19 }
  0xc5   :  { %v101_v21 = vpop.f32.mrf.mxu0 }
  0xc6   :  { %v102_v22 = vadd.f32 %v215_v20, %v101_v21 }
  0xc7   :  { %v244_v23 = vpop.f32.mrf.mxu0 }
  0xc8   :  { %v105_v24 = vmax.f32 %v102_v22, 0.0 }
  0xca   :  { %278 = vmatmul.mubr.f32.vlgmr.msra.gmra.mxu1 %v105_v24 }
 0x18a   :  { %v195_v26 = vpop.f32.mrf.mxu1 }
 0x18b   :  { %v196_v27 = vadd.f32 %v217_v25, %v195_v26 }
 0x18c   :  { %v279_v28 = vpop.f32.mrf.mxu1 }
 0x18d   :  { %200 = vst.msk [vmem:[#allocation2] sm:$0xff] %vm199_vm2, %v196_v27 }
 0x18e   :  { %294 = shalt.err (!%p291_p4)
}
 0x18f   :  { %210 = dma.vmem_to_hbm [thread:$0]  %s208_s7, 128, %s411_s5, [#allocation3]  }
 0x190   :  { %303 = dma.done.wait [#allocation3], 128  }
 0x191   :  { %304 = vsyncadd [#allocation3], 4294967168 }
 0x192   :  { %214 = vsyncpa [#allocation3], 1 }

</bundles_post_ra>
